<compile_context>
chip_gen: v7x
topology: tpu7x:2x2x1
jax: 0.10.0
libtpu: 0.0.40
codegen_flags: <defaults>
</compile_context>

<pallas_src>
import functools

import jax
import jax.numpy as jnp
from jax.experimental import pallas as pl
from jax.experimental.pallas import tpu as pltpu

IGNORE_LABEL = -1
THRESH = 0.7
MIN_KEPT = 100000
TILE_PIX_DEFAULT = 32768                  # max lanes per grid step (mult of 128)
_SCORE_BLOCK_BUDGET = 16 * 1024 * 1024    # double-buffered score block budget


class Config:
    num_output = 1
    balance_weights = (1.0,)
    align_corners = False


# ---------------------------------------------------------------------------
# Tiling helpers
# ---------------------------------------------------------------------------

def _pick_tile(c, p_lanes, itemsize, tile_cap):
    """Largest pixel tile (multiple of 128) whose double-buffered score block
    stays within _SCORE_BLOCK_BUDGET (v7x 64 MiB VMEM safe)."""
    t = _SCORE_BLOCK_BUDGET // (2 * c * itemsize)
    t = min(t, tile_cap, p_lanes)
    t = max(128, (t // 128) * 128)
    return int(t)


def _vmem_limit_bytes(c, tile, itemsize):
    # double-buffered score + target + f32 loss/scratch, plus slack
    need = 2 * tile * (c * itemsize + 4 + 4 + 4) + (4 << 20)
    return int(min(max(need, 24 << 20), 64 << 20))


def _prep_inputs(score, target, ignore_label, tile_pix):
    """(N,C,H,W)/(N,H,W) -> (N,C,P128)/(N,1,P128). Only pads to the next
    multiple of 128 lanes (no-op for typical seg resolutions)."""
    n, c, h, w = score.shape
    assert target.shape == (n, h, w), (
        "score/target spatial sizes must match")  # TODO(synk): F.interpolate
    p = h * w
    p_arr = pl.cdiv(p, 128) * 128
    score3 = score.reshape(n, c, p)                     # free reshape, no transpose
    target3 = target.reshape(n, 1, p).astype(jnp.int32)
    if p_arr != p:
        score3 = jnp.pad(score3, ((0, 0), (0, 0), (0, p_arr - p)))
        target3 = jnp.pad(target3, ((0, 0), (0, 0), (0, p_arr - p)),
                          constant_values=ignore_label)
    tile = _pick_tile(c, p_arr, score3.dtype.itemsize, tile_pix)
    return score3, target3, tile, p_arr, p


# ---------------------------------------------------------------------------
# Kernels
# ---------------------------------------------------------------------------

def _pixel_ce_kernel(score_ref, target_ref, loss_ref, *,
                     ignore_label, tile, p_total, invalid_fill):
    """Per-pixel CE loss = -log_softmax(score)[target].

    score_ref : (1, C, T)  any float  -- classes on sublanes, pixels on lanes
    target_ref: (1, 1, T)  int32
    loss_ref  : (1, 1, T)  float32    -- invalid/out-of-range lanes = invalid_fill
    """
    pi = pl.program_id(1)
    x = score_ref[0].astype(jnp.float32)        # (C, T)
    t = target_ref[0]                           # (1, T) int32

    m = jnp.max(x, axis=0, keepdims=True)       # (1, T)
    ex = jnp.exp(x - m)                         # (C, T)
    lse = jnp.log(jnp.sum(ex, axis=0, keepdims=True)) + m   # (1, T)

    # per-class select-accumulate over the C sublane rows (no lane-padded onehot)
    cls = jax.lax.broadcasted_iota(jnp.int32, x.shape, 0)          # (C, T)
    logit_t = jnp.sum(jnp.where(cls == t, x, 0.0), axis=0, keepdims=True)

    # lane mask covers both ignore_label pixels and ragged-final-block lanes
    lane = jax.lax.broadcasted_iota(jnp.int32, t.shape, 1)          # (1, T)
    valid = (t != ignore_label) & (pi * tile + lane < p_total)

    loss_ref[0] = jnp.where(valid, lse - logit_t, invalid_fill)


def _ce_mean_kernel(score_ref, target_ref, loss_out_ref, cnt_out_ref,
                    loss_acc, cnt_acc, *,
                    ignore_label, tile, tiles_per_chunk, n_chunks, p_total):
    """Per-(batch, pixel-chunk) partial (sum of CE losses, count of valid pixels).

    Lane-dense (1, T) partials are accumulated in VMEM scratch every step; the
    cross-lane reduce + tiny store happen only on the last tile of the chunk.
    """
    t = pl.program_id(1)

    @pl.when(t == 0)
    def _():
        loss_acc[...] = jnp.zeros_like(loss_acc)
        cnt_acc[...] = jnp.zeros_like(cnt_acc)

    x = score_ref[0].astype(jnp.float32)        # (C, T)
    tgt = target_ref[0]                         # (1, T)

    m = jnp.max(x, axis=0, keepdims=True)
    ex = jnp.exp(x - m)
    lse = jnp.log(jnp.sum(ex, axis=0, keepdims=True)) + m

    cls = jax.lax.broadcasted_iota(jnp.int32, x.shape, 0)
    logit_t = jnp.sum(jnp.where(cls == tgt, x, 0.0), axis=0, keepdims=True)

    chunk = pl.program_id(0) % n_chunks
    base = (chunk * tiles_per_chunk + t) * tile
    lane = jax.lax.broadcasted_iota(jnp.int32, tgt.shape, 1)
    valid = (tgt != ignore_label) & (base + lane < p_total)

    loss_acc[...] += jnp.where(valid, lse - logit_t, 0.0)
    cnt_acc[...] += valid.astype(jnp.float32)

    @pl.when(t == pl.num_programs(1) - 1)
    def _():
        loss_out_ref[0, 0, 0] = jnp.sum(loss_acc[...])
        cnt_out_ref[0, 0, 0] = jnp.sum(cnt_acc[...])


# ---------------------------------------------------------------------------
# Wrappers
# ---------------------------------------------------------------------------

def _pixelwise_ce(score, target, *, ignore_label, tile_pix, invalid_fill):
    """Run the per-pixel kernel. Returns loss of shape (N, P128)."""
    n, c, h, w = score.shape
    score3, target3, tile, p_arr, p = _prep_inputs(score, target,
                                                   ignore_label, tile_pix)
    num_tiles = pl.cdiv(p_arr, tile)

    kernel = functools.partial(_pixel_ce_kernel, ignore_label=ignore_label,
                               tile=tile, p_total=p, invalid_fill=invalid_fill)
    loss = pl.pallas_call(
        kernel,
        out_shape=jax.ShapeDtypeStruct((n, 1, p_arr), jnp.float32),
        grid_spec=pltpu.PrefetchScalarGridSpec(
            num_scalar_prefetch=0,
            grid=(n, num_tiles),
            in_specs=[
                pl.BlockSpec((1, c, tile), lambda b, pi: (b, 0, pi)),
                pl.BlockSpec((1, 1, tile), lambda b, pi: (b, 0, pi)),
            ],
            out_specs=pl.BlockSpec((1, 1, tile), lambda b, pi: (b, 0, pi)),
        ),
        compiler_params=pltpu.CompilerParams(
            dimension_semantics=("parallel", "parallel"),
            vmem_limit_bytes=_vmem_limit_bytes(c, tile, score3.dtype.itemsize),
        ),
    )(score3, target3)

    return loss.reshape(n, p_arr)


def cross_entropy_mean_loss(score, target, *, ignore_label=IGNORE_LABEL,
                            tile_pix=TILE_PIX_DEFAULT):
    """nn.CrossEntropyLoss(ignore_index=ignore_label) mean over valid pixels."""
    n, c, h, w = score.shape
    score3, target3, tile, p_arr, p = _prep_inputs(score, target,
                                                   ignore_label, tile_pix)
    num_tiles = pl.cdiv(p_arr, tile)

    # split pixel tiles into parallel chunks so both v7x TCs get work at small N
    n_chunks = 1
    for g in (8, 4, 2):
        if num_tiles % g == 0:
            n_chunks = g
            break
    tiles_per_chunk = num_tiles // n_chunks

    kernel = functools.partial(
        _ce_mean_kernel, ignore_label=ignore_label, tile=tile,
        tiles_per_chunk=tiles_per_chunk, n_chunks=n_chunks, p_total=p)

    loss_parts, cnt_parts = pl.pallas_call(
        kernel,
        out_shape=(
            jax.ShapeDtypeStruct((n * n_chunks, 1, 1), jnp.float32),
            jax.ShapeDtypeStruct((n * n_chunks, 1, 1), jnp.float32),
        ),
        grid_spec=pltpu.PrefetchScalarGridSpec(
            num_scalar_prefetch=0,
            grid=(n * n_chunks, tiles_per_chunk),
            in_specs=[
                pl.BlockSpec(
                    (1, c, tile),
                    lambda bg, t: (bg // n_chunks, 0,
                                   (bg % n_chunks) * tiles_per_chunk + t)),
                pl.BlockSpec(
                    (1, 1, tile),
                    lambda bg, t: (bg // n_chunks, 0,
                                   (bg % n_chunks) * tiles_per_chunk + t)),
            ],
            out_specs=[
                pl.BlockSpec((1, 1, 1), lambda bg, t: (bg, 0, 0)),
                pl.BlockSpec((1, 1, 1), lambda bg, t: (bg, 0, 0)),
            ],
            scratch_shapes=[
                pltpu.VMEM((1, tile), jnp.float32),
                pltpu.VMEM((1, tile), jnp.float32),
            ],
        ),
        compiler_params=pltpu.CompilerParams(
            dimension_semantics=("parallel", "arbitrary"),
            vmem_limit_bytes=_vmem_limit_bytes(c, tile, score3.dtype.itemsize),
        ),
    )(score3, target3)

    return jnp.sum(loss_parts) / jnp.sum(cnt_parts)


def ce_forward_pixelwise(score, target, *, ignore_label=IGNORE_LABEL,
                         tile_pix=TILE_PIX_DEFAULT):
    """OhemCrossEntropy._ce_forward: per-pixel CE map (reduction='none')."""
    n, c, h, w = score.shape
    p = h * w
    loss = _pixelwise_ce(score, target, ignore_label=ignore_label,
                         tile_pix=tile_pix, invalid_fill=0.0)
    return loss[:, :p].reshape(n, h, w)


def ohem_cross_entropy_loss(score, target, *, ignore_label=IGNORE_LABEL,
                            thresh=THRESH, min_kept=MIN_KEPT,
                            tile_pix=TILE_PIX_DEFAULT):
    """OhemCrossEntropy._ohem_forward.

    OHEM selection is done in loss space: prob_t = exp(-loss), so
        prob < max(kth_smallest_prob, thresh)
    <=> loss > min(kth_largest_loss, -log(thresh)).
    Invalid / padded pixels carry loss = -inf and are never selected.
    """
    loss_flat = _pixelwise_ce(score, target, ignore_label=ignore_label,
                              tile_pix=tile_pix,
                              invalid_fill=float("-inf")).reshape(-1)
    total = loss_flat.shape[0]

    min_kept_eff = max(1, int(min_kept))
    k_static = min(min_kept_eff + 1, total)

    # k-th smallest prob == k-th largest loss; top_k is O(P) vs O(P log P) sort.
    top_losses, _ = jax.lax.top_k(loss_flat, k_static)          # descending

    n_valid = jnp.sum((loss_flat > -jnp.inf).astype(jnp.int32))
    idx = jnp.clip(jnp.minimum(min_kept_eff, n_valid - 1), 0, k_static - 1)
    kth_loss = top_losses[idx]

    thr_loss = jnp.minimum(kth_loss, -jnp.log(jnp.float32(thresh)))
    kept = loss_flat > thr_loss                                  # -inf never kept
    n_kept = jnp.sum(kept.astype(jnp.float32))
    loss_sum = jnp.sum(jnp.where(kept, loss_flat, 0.0))
    # TODO(synk): PyTorch returns NaN for an empty kept set; we return 0 instead.
    return loss_sum / jnp.maximum(n_kept, 1.0)


def ohem_cross_entropy_forward(score, target, *, ignore_label=IGNORE_LABEL,
                               thresh=THRESH, min_kept=MIN_KEPT):
    """Mirror of OhemCrossEntropy.forward (Config.num_output == 1)."""
    scores = [score] if Config.num_output == 1 else list(score)
    weights = Config.balance_weights
    assert len(weights) == len(scores)
    total = 0.0
    for i, (w_, s_) in enumerate(zip(weights, scores)):
        if i < len(weights) - 1:
            # auxiliary heads use _ce_forward (reduction='none' per-pixel map)
            total = total + w_ * ce_forward_pixelwise(
                s_, target, ignore_label=ignore_label)
        else:
            total = total + w_ * ohem_cross_entropy_loss(
                s_, target, ignore_label=ignore_label,
                thresh=thresh, min_kept=min_kept)
    return total


# ---------------------------------------------------------------------------
# Pure-JAX references (for correctness checks only)
# ---------------------------------------------------------------------------

def _reference_pixelwise(score, target, ignore_label=IGNORE_LABEL):
    n, c, h, w = score.shape
    x = jnp.transpose(score, (0, 2, 3, 1)).reshape(-1, c).astype(jnp.float32)
    t = target.reshape(-1)
    valid = t != ignore_label
    t_safe = jnp.where(valid, t, 0)
    logp = jax.nn.log_softmax(x, axis=-1)
    nll = -jnp.take_along_axis(logp, t_safe[:, None], axis=-1)[:, 0]
    nll = jnp.where(valid, nll, 0.0)
    p_t = jnp.take_along_axis(jax.nn.softmax(x, axis=-1),
                              t_safe[:, None], axis=-1)[:, 0]
    return nll, p_t, valid


def _reference_ce_mean(score, target, ignore_label=IGNORE_LABEL):
    nll, _, valid = _reference_pixelwise(score, target, ignore_label)
    return jnp.sum(nll) / jnp.sum(valid.astype(jnp.float32))


def _reference_ohem(score, target, ignore_label=IGNORE_LABEL,
                    thresh=THRESH, min_kept=MIN_KEPT):
    nll, p_t, valid = _reference_pixelwise(score, target, ignore_label)
    n_valid = jnp.sum(valid.astype(jnp.int32))
    p_sorted = jnp.sort(jnp.where(valid, p_t, jnp.inf))
    k = jnp.clip(jnp.minimum(max(1, int(min_kept)), n_valid - 1), 0,
                 p_sorted.shape[0] - 1)
    threshold = jnp.maximum(p_sorted[k], jnp.float32(thresh))
    kept = valid & (p_t < threshold)
    kf = kept.astype(jnp.float32)
    return jnp.sum(nll * kf) / jnp.maximum(jnp.sum(kf), 1.0)


# ---------------------------------------------------------------------------
# Self-test
# ---------------------------------------------------------------------------

if __name__ == "__main__":
    key = jax.random.PRNGKey(0)
    k1, k2, k3 = jax.random.split(key, 3)

    N, C, H, W = 2, 4, 16, 16
    score = jax.random.normal(k1, (N, C, H, W), dtype=jnp.float32)
    target = jax.random.randint(k2, (N, H, W), 0, C, dtype=jnp.int32)
    ignore_mask = jax.random.bernoulli(k3, 0.1, (N, H, W))
    target = jnp.where(ignore_mask, IGNORE_LABEL, target)

    # 1) module forward (num_output=1, balance_weights=(1.0,) -> OHEM branch)
    loss = jax.block_until_ready(ohem_cross_entropy_forward(score, target))
    ref = jax.block_until_ready(_reference_ohem(score, target))
    assert jnp.allclose(loss, ref, rtol=5e-4, atol=1e-5), (loss, ref)

    # 2) per-pixel CE map (auxiliary-head / reduction='none' path)
    loss_map = jax.block_until_ready(ce_forward_pixelwise(score, target))
    ref_map, _, _ = _reference_pixelwise(score, target)
    ref_map = jax.block_until_ready(ref_map.reshape(N, H, W))
    assert jnp.allclose(loss_map, ref_map, rtol=1e-4, atol=1e-5)

    # 3) mean-CE reduction kernel (scratch accumulator + per-chunk partials)
    ce = jax.block_until_ready(cross_entropy_mean_loss(score, target))
    ce_ref = jax.block_until_ready(_reference_ce_mean(score, target))
    assert jnp.allclose(ce, ce_ref, rtol=1e-4, atol=1e-5), (ce, ce_ref)

    # 4) ragged spatial size: H*W=300 -> 128-lane pad + partial last pixel tile
    H2, W2 = 10, 30
    k4, k5, k6 = jax.random.split(jax.random.PRNGKey(1), 3)
    score2 = jax.random.normal(k4, (N, C, H2, W2), dtype=jnp.float32)
    target2 = jax.random.randint(k5, (N, H2, W2), 0, C, dtype=jnp.int32)
    target2 = jnp.where(jax.random.bernoulli(k6, 0.1, (N, H2, W2)),
                        IGNORE_LABEL, target2)
    loss2 = jax.block_until_ready(
        ohem_cross_entropy_loss(score2, target2, tile_pix=256))
    ref2 = jax.block_until_ready(_reference_ohem(score2, target2))
    assert jnp.allclose(loss2, ref2, rtol=5e-4, atol=1e-5), (loss2, ref2)
    ce2 = jax.block_until_ready(
        cross_entropy_mean_loss(score2, target2, tile_pix=256))
    ce2_ref = jax.block_until_ready(_reference_ce_mean(score2, target2))
    assert jnp.allclose(ce2, ce2_ref, rtol=1e-4, atol=1e-5), (ce2, ce2_ref)

    # 5) bf16 logits path (halves the dominant HBM read; LSE math stays f32)
    _ = jax.block_until_ready(
        ohem_cross_entropy_loss(score.astype(jnp.bfloat16), target))

    print("KERNEL_OK")
</pallas_src>

<mosaic_0001>
module attributes {stable_mosaic.version = 11 : i64} {
  func.func @_pixel_ce_kernel(%arg0: i32, %arg1: i32, %arg2: memref<1x4x256xf32, #tpu.memory_space<vmem>>, %arg3: memref<1x1x256xi32, #tpu.memory_space<vmem>>, %arg4: memref<1x1x256xf32, #tpu.memory_space<vmem>>) attributes {dimension_semantics = [#tpu.dimension_semantics<parallel>, #tpu.dimension_semantics<parallel>], iteration_bounds = array<i64: 2, 1>, scalar_prefetch = 0 : i64, scratch_operands = 0 : i64, tpu.core_type = #tpu.core_type<tc>, window_params = [{transform_indices = @transform_0, window_bounds = array<i64: 1, 4, 256>}, {transform_indices = @transform_1, window_bounds = array<i64: 1, 1, 256>}, {transform_indices = @transform_2, window_bounds = array<i64: 1, 1, 256>}]} {
    %c0 = arith.constant 0 : index
    %c0_0 = arith.constant 0 : index
    %c0_1 = arith.constant 0 : index
    %0 = vector.load %arg2[%c0, %c0_0, %c0_1] : memref<1x4x256xf32, #tpu.memory_space<vmem>>, vector<1x4x256xf32>
    %1 = vector.shape_cast %0 : vector<1x4x256xf32> to vector<4x256xf32>
    %c0_2 = arith.constant 0 : index
    %c0_3 = arith.constant 0 : index
    %c0_4 = arith.constant 0 : index
    %2 = vector.load %arg3[%c0_2, %c0_3, %c0_4] : memref<1x1x256xi32, #tpu.memory_space<vmem>>, vector<1x1x256xi32>
    %3 = vector.shape_cast %2 : vector<1x1x256xi32> to vector<1x256xi32>
    %cst = arith.constant dense<0xFF800000> : vector<256xf32>
    %4 = vector.multi_reduction <maximumf>, %1, %cst [0] : vector<4x256xf32> to vector<256xf32>
    %5 = vector.shape_cast %4 : vector<256xf32> to vector<1x256xf32>
    %6 = vector.broadcast %5 : vector<1x256xf32> to vector<4x256xf32>
    %7 = arith.subf %1, %6 : vector<4x256xf32>
    %8 = math.exp %7 : vector<4x256xf32>
    %cst_5 = arith.constant dense<0.000000e+00> : vector<256xf32>
    %9 = vector.multi_reduction <add>, %8, %cst_5 [0] : vector<4x256xf32> to vector<256xf32>
    %10 = vector.shape_cast %9 : vector<256xf32> to vector<1x256xf32>
    %11 = math.log %10 : vector<1x256xf32>
    %12 = arith.addf %11, %5 : vector<1x256xf32>
    %13 = tpu.iota {dimensions = array<i32: 0>} : vector<4x256xi32>
    %14 = vector.broadcast %3 : vector<1x256xi32> to vector<4x256xi32>
    %15 = arith.cmpi eq, %13, %14 : vector<4x256xi32>
    %cst_6 = arith.constant 0.000000e+00 : f32
    %16 = vector.broadcast %cst_6 : f32 to vector<4x256xf32>
    %17 = arith.select %15, %1, %16 : vector<4x256xi1>, vector<4x256xf32>
    %cst_7 = arith.constant dense<0.000000e+00> : vector<256xf32>
    %18 = vector.multi_reduction <add>, %17, %cst_7 [0] : vector<4x256xf32> to vector<256xf32>
    %19 = vector.shape_cast %18 : vector<256xf32> to vector<1x256xf32>
    %20 = tpu.iota {dimensions = array<i32: 1>} : vector<1x256xi32>
    %c-1_i32 = arith.constant -1 : i32
    %21 = vector.broadcast %c-1_i32 : i32 to vector<1x256xi32>
    %22 = arith.cmpi ne, %3, %21 : vector<1x256xi32>
    %c256_i32 = arith.constant 256 : i32
    %23 = arith.muli %arg1, %c256_i32 : i32
    %24 = vector.broadcast %23 : i32 to vector<1x256xi32>
    %25 = arith.addi %24, %20 : vector<1x256xi32>
    %c256_i32_8 = arith.constant 256 : i32
    %26 = vector.broadcast %c256_i32_8 : i32 to vector<1x256xi32>
    %27 = arith.cmpi slt, %25, %26 : vector<1x256xi32>
    %28 = arith.andi %22, %27 : vector<1x256xi1>
    %29 = arith.subf %12, %19 : vector<1x256xf32>
    %cst_9 = arith.constant 0xFF800000 : f32
    %30 = vector.broadcast %cst_9 : f32 to vector<1x256xf32>
    %31 = arith.select %28, %29, %30 : vector<1x256xi1>, vector<1x256xf32>
    %c0_10 = arith.constant 0 : index
    %c0_11 = arith.constant 0 : index
    %c0_12 = arith.constant 0 : index
    %32 = vector.load %arg4[%c0_10, %c0_11, %c0_12] : memref<1x1x256xf32, #tpu.memory_space<vmem>>, vector<1x1x256xf32>
    %33 = vector.shape_cast %32 : vector<1x1x256xf32> to vector<1x256xf32>
    %34 = vector.shape_cast %31 : vector<1x256xf32> to vector<1x1x256xf32>
    tpu.vector_store %arg4[%c0_10, %c0_11, %c0_12], %34 {strides = array<i32>} : memref<1x1x256xf32, #tpu.memory_space<vmem>>, vector<1x1x256xf32>,
    return
  }
  func.func @transform_0(%arg0: i32, %arg1: i32) -> (i32, i32, i32) {
    %c0_i32 = arith.constant 0 : i32
    %c0_i32_0 = arith.constant 0 : i32
    return %arg0, %c0_i32, %arg1 : i32, i32, i32
  }
  func.func @transform_1(%arg0: i32, %arg1: i32) -> (i32, i32, i32) {
    %c0_i32 = arith.constant 0 : i32
    %c0_i32_0 = arith.constant 0 : i32
    return %arg0, %c0_i32, %arg1 : i32, i32, i32
  }
  func.func @transform_2(%arg0: i32, %arg1: i32) -> (i32, i32, i32) {
    %c0_i32 = arith.constant 0 : i32
    %c0_i32_0 = arith.constant 0 : i32
    return %arg0, %c0_i32, %arg1 : i32, i32, i32
  }
}

</mosaic_0001>

<bundles_post_ra>
// kernel: tpu_custom_call.1
= control target key start
LH: loop header
LB: loop body
LE: loop exit
PB: predicated region body
PF: predicated region fallthrough
CT: control target
= control target key end

     0   :  { %7 = vsyncpa [#allocation3], 0  ;;  %s981_s0 = inlined_call_operand.hbm [shape: f32[2,4,256], index: 0, kind: input, shape index: {}]   ;;  %s982_s1 = inlined_call_operand.hbm [shape: s32[2,1,256], index: 1, kind: input, shape index: {}]   ;;  %s983_s2 = inlined_call_operand.hbm [shape: f32[2,1,256], index: 2, kind: output, shape index: {}]  }
   0x1   :  { %9 = vsyncpa [#allocation3 + $0x1], 0 }
   0x2   :  { %10 = vsyncpa [#allocation6], 0 }
   0x3   :  { %12 = vsyncpa [#allocation6 + $0x1], 0 }
   0x4   :  { %13 = vsyncpa [#allocation4], 0 }
   0x5   :  { %15 = vsyncpa [#allocation4 + $0x1], 0  ;;  %s749_s9 = smov 0   ;;  %s751_s10 = smov 0  }
   0x6   :  { %s753_s11 = smov 0   ;;  %s755_s12 = smov 0  }
   0x7   :  { %s757_s13 = smov 0   ;;  %s759_s14 = smov 0  }
   0x8 LB: > { %s483_s15 = sadd.s32 4294967295, %s727_s14   ;;  %s484_s16 = sadd.s32 4294967294, %s727_s14   ;;  %s727_s14 = sphi %s759_s14, %s21_s14   ;;  %s723_s13 = sphi %s757_s13, %s1003_s13   ;;  %s719_s12 = sphi %s755_s12, %s1002_s12   ;;  %s715_s11 = sphi %s753_s11, %s1001_s11   ;;  %s711_s10 = sphi %s751_s10, %s1000_s10   ;;  %s707_s9 = sphi %s749_s9, %s999_s9  }
   0x9   : > { %s33_s17 = sadd.s32 1, %s723_s13  ;;  %s42_s18 = sadd.s32 1, %s715_s11 }
   0xa   : > { %p35_p0 = scmp.ge.s32.totalorder %s33_s17, 2  ;;  %p49_p1 = scmp.ne.s32.totalorder %s715_s11, %s711_s10 }
   0xb   : > { %p50_p2 = scmp.eq.s32.totalorder %s727_s14, 0  ;;  %p55_p3 = scmp.ne.s32.totalorder %s711_s10, %s707_s9 }
   0xc   : > { %s1005_s17 = smov (%p35_p0, %s33_s17), 0  ;;  %p56_p5 = scmp.eq.s32.totalorder %s483_s15, 0 }
   0xd   : > { %p790_p4 = por %p50_p2, %p49_p1  ;;  %s37_s20 = ssub.s32 %s723_s13, %s1005_s17 }
   0xe   : > { %p109_p6 = scmp.eq.s32.totalorder %s483_s15, 1  ;;  %p40_p7 = scmp.eq.s32.totalorder %s37_s20, 0 }
   0xf   : > { %p796_p8 = por %p56_p5, %p55_p3  ;;  %p115_p10 = scmp.eq.s32.totalorder %s484_s16, 1 }
  0x10   : > { %p800_p9 = por %p109_p6, %p49_p1  ;;  %p522_p13 = scmp.lt.s32.totalorder %s727_s14, 2 }
  0x11   : > { %s987_s21 = scalar_select %p796_p8, 1, 0 }
  0x12   : > { %s988_s22 = scalar_select %p800_p9, 1, 0 }
  0x13   : > { %s805_s23 = scalar_select %p40_p7, %s715_s11, %s42_s18  }
  0x14   : > { %p807_p11 = por %p115_p10, %p55_p3  ;;  %s814_s25 = sand.u32 1, %s715_s11  }
  0x15   : > { %s487_s26 = sshll.u32 %s814_s25, 3  ;;  %s502_s27 = sshll.u32 %s723_s13, 7 }
  0x16   : > { %s989_s24 = scalar_select %p807_p11, 1, 0 }
  0x17   : > { %s821_s30 = scalar_lea.hbm %s981_s0, %s502_s27  ;;  %s139_s3 = scalar_lea.vmem [#allocation2], %s487_s26 }
  0x18   : > { %s149_s4 = sshll.u32 %s139_s3, 4  ;;  %p827_p0 = pnand %p522_p13, %p790_p4  ;;  %s823_s4 = int_to_ptr.vmem [resolvable:$true] %s149_s4 }
  0x19   : > { %s136_s6 = scalar_lea.sflag [#allocation3], %s814_s25  ;;  %s581_s7 = scalar_lea.hbm %s821_s30, 128 }
  0x1a   : > { %p582_p3 = scmp.ne.s32.totalorder %s821_s30, %s581_s7  ;;  %p583_p5 = pneg %p827_p0 }
  0x1b   : > { %s586_s16 = scalar_lea.hbm %s981_s0, 256  ;;  %p587_p4 = scmp.lt.u32.totalorder %s821_s30, %s981_s0 }
  0x1c   : > { %p584_p6 = pnand %p583_p5, %p582_p3  ;;  %p588_p10 = scmp.lt.u32.totalorder %s586_s16, %s581_s7 }
  0x1d   : > { %p590_p12 = scmp.lt.u32.totalorder %s581_s7, %s821_s30 }
  0x1e   : > { %p585_p7 = pneg %p584_p6  ;;  %p589_p13 = por %p588_p10, %p587_p4 }
  0x20   : > { %p591_p1 = por %p590_p12, %p589_p13 }
  0x22   : > { %p592_p2 = pnand %p591_p1, %p585_p7 }
  0x24   : > { %595 = shalt.err (!%p592_p2)
}
  0x25   : > { %s596_s20 = scalar_lea.vmem %s823_s4, 128  ;;  %s729_s26 = smov [#allocation2]  }
  0x26   : > { %p597_p3 = scmp.ne.s32.totalorder %s823_s4, %s596_s20  ;;  %s601_s27 = sshll.u32 %s729_s26, 4  ;;  %s602_s27 = int_to_ptr.vmem [resolvable:$false] %s601_s27 }
  0x27   : > { %s603_s28 = scalar_lea.vmem %s602_s27, 256  ;;  %p604_p9 = scmp.lt.s32.totalorder %s823_s4, %s602_s27 }
  0x28   : > { %p599_p6 = pnand %p597_p3, %p583_p5  ;;  %p605_p4 = scmp.lt.s32.totalorder %s603_s28, %s596_s20 }
  0x2a   : > { %p600_p11 = pneg %p599_p6  ;;  %p606_p10 = por %p605_p4, %p604_p9 }
  0x2c   : > { %p607_p12 = pnand %p606_p10, %p600_p11 }
  0x2e   : > { %610 = shalt.err (!%p607_p12)
}
  0x2f   : > { %514 = dma.hbm_to_vmem [thread:$0]  (!%p827_p0), %s821_s30, 128, %s823_s4, %s136_s6  }
  0x30   : > { %p991_p1 = scmp.lt.s32.totalorder %s727_s14, 3  ;;  %p992_p2 = scmp.ge.s32.totalorder %s727_s14, 1 }
  0x31   : > { %s490_s3 = sshll.u32 %s814_s25, 1  ;;  %s503_s7 = sshll.u32 %s723_s13, 5 }
  0x32   : > { %p863_p7 = pnand %p992_p2, %p991_p1  ;;  %s872_s16 = scalar_lea.hbm %s982_s1, %s503_s7 }
  0x33   : > { %s160_s18 = scalar_lea.vmem [#allocation5], %s490_s3  ;;  %s157_s30 = scalar_lea.sflag [#allocation6], %s814_s25 }
  0x34   : > { %s993_s29 = scalar_select %p863_p7, 1, 0 }
  0x35   : > { %s170_s19 = sshll.u32 %s160_s18, 4  ;;  %s611_s4 = scalar_lea.hbm %s872_s16, 32  ;;  %s171_s19 = int_to_ptr.vmem [resolvable:$true] %s170_s19 }
  0x36   : > { %p612_p9 = scmp.ne.s32.totalorder %s872_s16, %s611_s4  ;;  %s616_s26 = scalar_lea.hbm %s982_s1, 64 }
  0x37   : > { %p617_p3 = scmp.lt.u32.totalorder %s872_s16, %s982_s1  ;;  %p618_p6 = scmp.lt.u32.totalorder %s616_s26, %s611_s4 }
  0x38   : > { %p614_p11 = pnand %p612_p9, %p583_p5  ;;  %p620_p10 = scmp.lt.u32.totalorder %s611_s4, %s872_s16 }
  0x39   : > { %p619_p4 = por %p618_p6, %p617_p3 }
  0x3a   : > { %p615_p13 = pneg %p614_p11 }
  0x3b   : > { %p621_p12 = por %p620_p10, %p619_p4 }
  0x3d   : > { %p622_p1 = pnand %p621_p12, %p615_p13 }
  0x3f   : > { %625 = shalt.err (!%p622_p1)
}
  0x40   : > { %s626_s25 = scalar_lea.vmem %s171_s19, 32  ;;  %s730_s3 = smov [#allocation5]  }
  0x41   : > { %p627_p2 = scmp.ne.s32.totalorder %s171_s19, %s626_s25  ;;  %s631_s7 = sshll.u32 %s730_s3, 4  ;;  %s632_s7 = int_to_ptr.vmem [resolvable:$false] %s631_s7 }
  0x42   : > { %s633_s8 = scalar_lea.vmem %s632_s7, 64  ;;  %p634_p8 = scmp.lt.s32.totalorder %s171_s19, %s632_s7 }
  0x43   : > { %p629_p9 = pnand %p627_p2, %p583_p5  ;;  %p635_p7 = scmp.lt.s32.totalorder %s633_s8, %s626_s25 }
  0x45   : > { %p630_p11 = pneg %p629_p9  ;;  %p636_p3 = por %p635_p7, %p634_p8 }
  0x47   : > { %p637_p6 = pnand %p636_p3, %p630_p11 }
  0x49   : > { %640 = shalt.err (!%p637_p6)
}
  0x4a   : > { %517 = dma.hbm_to_vmem [thread:$0]  (!%p827_p0), %s872_s16, 32, %s171_s19, %s157_s30  }
  0x4b   : > { %p994_p13 = scmp.ne.s32.totalorder %s993_s29, 0 }
  0x4c   : > { %s897_s15 = sand.u32 (!%p994_p13), 1, %s711_s10   ;;  %p995_p5 = scmp.ne.s32.totalorder (!%p994_p13), %s987_s21, 0 }
  0x4d   : > { %179 = sbr.rel (%p994_p13) target bundleno = 174 (0xae), region = 28  ;;  %s494_s18 = sshll.u32 (!%p994_p13), %s897_s15, 3 }
  0x4e   : > { %s182_s4 = scalar_lea.sflag (!%p994_p13), [#allocation3], %s897_s15  ;;  %s185_s6 = scalar_lea.vmem (!%p994_p13), [#allocation2], %s494_s18 }
  0x54   : > { %694 = dma.done.wait (%p995_p5), %s182_s4, 128  }
  0x55   : > { %696 = vsyncadd (%p995_p5), %s182_s4, 4294967168  ;;  %s495_s5 = sshll.u32 %s897_s15, 1  ;;  %s191_s29 = scalar_lea.sflag [#allocation6], %s897_s15 }
  0x56   : > { %s194_s16 = scalar_lea.vmem [#allocation5], %s495_s5 }
  0x57   : > { %698 = dma.done.wait (%p995_p5), %s191_s29, 32  }
  0x58   : > { %700 = vsyncadd (%p995_p5), %s191_s29, 4294967264  ;;  %vm228_vm0 = vcmask 1043456   ;;  %v223_v0 = vld [vmem:[%s185_s6] sm:$0xff]  ;;  %v273_v15 = vlaneseq  ;;  %v916_v22 = vld [vmem:[%s194_s16] sm:$0x3]  ;;  %v732_v58 = vmov 1  }
  0x59   : > { %v226_v1 = vcombine.high %v223_v0, %v223_v0  ;;  %v229_v2 = vsel %vm228_vm0, %v223_v0, -inf  ;;  %v731_v50 = vmov 1966171168   ;;  %v313_v59 = vcombine.low %v732_v58, %v732_v58  ;;  %s219_s21 = scalar_lea.vmem [#allocation7], %s495_s5  ;;  %s504_s30 = sshll.u32 %s719_s12, 5 }
  0x5a   : > { %v230_v3 = vrot.slane %v229_v2, 4  ;;  %v274_v18 = vshrl.u32 %v273_v15, 7  ;;  %v315_v51 = vunpack.c.l.s4 %v731_v50  ;;  %vm304_vm3 = vcmp.ne.s32.totalorder %v916_v22, 4294967295  ;;  %s373_s19 = sshll.u32 %s219_s21, 4  ;;  %s934_s27 = scalar_lea.hbm %s983_s2, %s504_s30  ;;  %s929_s19 = int_to_ptr.vmem [resolvable:$true] %s373_s19 }
  0x5b   : > { %v236_v4 = vsel %vm228_vm0, %v226_v1, -inf  ;;  %vm353_vm6 = vcmp.lt.s32.totalorder %v273_v15, 256  ;;  %s357_s28 = scalar_lea.sflag [#allocation4], %s897_s15  ;;  %s641_s25 = scalar_lea.vmem %s929_s19, 32 }
  0x5c   : > { %v231_v5 = vmax.f32 %v229_v2, %v230_v3  ;;  %v237_v6 = vrot.slane %v236_v4, 4  ;;  %v277_v21 = vsub.s32 0, %v274_v18  ;;  %v281_v23 = vsub.s32 1, %v274_v18  ;;  %p642_p8 = scmp.ne.s32.totalorder %s929_s19, %s641_s25  ;;  %p996_p0 = scmp.ne.s32.totalorder %s988_s22, 0 }
  0x5d   : > { %v316_v55 = vunpack.c.0.s8 %v315_v51  ;;  %s733_s12 = smov [#allocation7]  }
  0x5e   : > { %v232_v7 = vrot.slane %v231_v5, 2  ;;  %v238_v8 = vmax.f32 %v236_v4, %v237_v6  ;;  %v278_v24 = vrot.slane %v916_v22, %v277_v21  ;;  %v282_v25 = vrot.slane %v916_v22, %v281_v23  ;;  %p643_p7 = pnand %p642_p8, %p996_p0  ;;  %s645_s3 = sshll.u32 %s733_s12, 4  ;;  %s646_s3 = int_to_ptr.vmem [resolvable:$false] %s645_s3 }
  0x5f   : > { %v319_v60 = vsub.s32 %v316_v55, %v274_v18  ;;  %s647_s7 = scalar_lea.vmem %s646_s3, 64  ;;  %p648_p10 = scmp.lt.s32.totalorder %s929_s19, %s646_s3 }
  0x60   : > { %v233_v9 = vmax.f32 %v231_v5, %v232_v7  ;;  %v239_v10 = vrot.slane %v238_v8, 2  ;;  %vm283_vm1 = vcmp.eq.s32.totalorder %v274_v18, %v278_v24  ;;  %vm284_vm2 = vcmp.eq.s32.totalorder %v274_v18, %v282_v25  ;;  %p644_p4 = pneg %p643_p7  ;;  %p649_p12 = scmp.lt.s32.totalorder %s647_s7, %s641_s25 }
  0x61   : > { %v285_v26 = vsel %vm283_vm1, %v223_v0, 0.0  ;;  %v286_v30 = vsel %vm284_vm2, %v226_v1, 0.0  ;;  %v320_v1 = vrot.slane %v313_v59, %v319_v60 }
  0x62   : > { %v234_v11 = vrot.slane %v233_v9, 1  ;;  %v240_v12 = vmax.f32 %v238_v8, %v239_v10  ;;  %v287_v32 = vsel %vm228_vm0, %v285_v26, 0.0  ;;  %v294_v36 = vsel %vm228_vm0, %v286_v30, 0.0  ;;  %p650_p1 = por %p649_p12, %p648_p10 }
  0x63   : > { %v288_v37 = vrot.slane %v287_v32, 4  ;;  %v295_v40 = vrot.slane %v294_v36, 4  ;;  %v327_v7 = vrot.slane %v320_v1, %v319_v60 }
  0x64   : > { %v235_v13 = vmax.f32 %v233_v9, %v234_v11  ;;  %v241_v14 = vrot.slane %v240_v12, 1  ;;  %p651_p2 = pnand %p650_p1, %p644_p4 }
  0x65   : > { %v289_v43 = vadd.f32 %v288_v37, %v287_v32  ;;  %v296_v46 = vadd.f32 %v295_v40, %v294_v36  ;;  %vm328_vm4 = vcmp.ne.s32.totalorder %v327_v7, 0 }
  0x66   : > { %v242_v16 = vmax.f32 %v240_v12, %v241_v14  ;;  %vm329_vm5 = vmand %vm304_vm3, %vm328_vm4 }
  0x67   : > { %v290_v49 = vrot.slane %v289_v43, 2  ;;  %v297_v53 = vrot.slane %v296_v46, 2 }
  0x68   : > { %v245_v17 = vcombine.low %v235_v13, %v242_v16 }
  0x69   : > { %v291_v54 = vadd.f32 %v290_v49, %v289_v43  ;;  %v298_v56 = vadd.f32 %v297_v53, %v296_v46 }
  0x6a   : > { %v247_v19 = vsub.f32 %v223_v0, %v245_v17 }
  0x6b   : > { %v292_v57 = vrot.slane %v291_v54, 1  ;;  %v299_v61 = vrot.slane %v298_v56, 1 }
  0x6c   : > { %v248_v20 = vmul.f32 1.442695, %v247_v19 }
  0x6d   : > { %v293_v0 = vadd.f32 %v292_v57, %v291_v54  ;;  %v300_v5 = vadd.f32 %v299_v61, %v298_v56 }
  0x6e   : > { %575 = vpow2.f32 %v248_v20 }
  0x78   : > { %v576_v27 = vpop.eup %575 }
  0x79   : > { %v251_v28 = vcombine.high %v576_v27, %v576_v27  ;;  %v253_v29 = vsel %vm228_vm0, %v576_v27, 0.0 }
  0x7a   : > { %v254_v31 = vrot.slane %v253_v29, 4 }
  0x7b   : > { %v260_v33 = vsel %vm228_vm0, %v251_v28, 0.0 }
  0x7c   : > { %v255_v34 = vadd.f32 %v254_v31, %v253_v29  ;;  %v261_v35 = vrot.slane %v260_v33, 4 }
  0x7e   : > { %v256_v38 = vrot.slane %v255_v34, 2  ;;  %v262_v39 = vadd.f32 %v261_v35, %v260_v33 }
  0x80   : > { %v257_v41 = vadd.f32 %v256_v38, %v255_v34  ;;  %v263_v42 = vrot.slane %v262_v39, 2 }
  0x82   : > { %v258_v44 = vrot.slane %v257_v41, 1  ;;  %v264_v45 = vadd.f32 %v263_v42, %v262_v39 }
  0x84   : > { %v259_v47 = vadd.f32 %v258_v44, %v257_v41  ;;  %v265_v48 = vrot.slane %v264_v45, 1 }
  0x86   : > { %v266_v52 = vadd.f32 %v265_v48, %v264_v45  ;;  %577 = vlog2.f32 %v259_v47 }
  0x88   : > { %579 = vlog2.f32 %v266_v52 }
  0x90   : > { %v578_v62 = vpop.eup %577 }
  0x91   : > { %v268_v63 = vmul.f32 0.6931472, %v578_v62 }
  0x92   : > { %v580_v2 = vpop.eup %579 }
  0x93   : > { %v270_v3 = vmul.f32 0.6931472, %v580_v2  ;;  %v271_v4 = vadd.f32 %v268_v63, %v235_v13 }
  0x95   : > { %v272_v6 = vadd.f32 %v270_v3, %v242_v16  ;;  %v330_v8 = vsub.f32 %v271_v4, %v293_v0 }
  0x97   : > { %v331_v9 = vsub.f32 %v272_v6, %v300_v5 }
  0x99   : > { %v334_v10 = vcombine.low %v330_v8, %v331_v9 }
  0x9b   : > { %v341_v11 = vrot.slane %v334_v10, %v319_v60 }
  0x9d   : > { %v348_v12 = vrot.slane %v341_v11, %v319_v60 }
  0x9f   : > { %v350_v13 = vsel %vm329_vm5, %v348_v12, -inf }
  0xa0   : > { %355 = vst.msk [vmem:[%s219_s21] sm:$0x3] %vm353_vm6, %v350_v13 }
  0xa1   : > { %654 = shalt.err (!%p651_p2)
}
  0xa2   : > { %s655_s8 = scalar_lea.hbm %s934_s27, 32  ;;  %s659_s4 = scalar_lea.hbm %s983_s2, 64 }
  0xa3   : > { %p656_p9 = scmp.ne.s32.totalorder %s934_s27, %s655_s8  ;;  %p660_p6 = scmp.lt.u32.totalorder %s934_s27, %s983_s2 }
  0xa4   : > { %p661_p13 = scmp.lt.u32.totalorder %s659_s4, %s655_s8  ;;  %p663_p8 = scmp.lt.u32.totalorder %s655_s8, %s934_s27 }
  0xa5   : > { %p657_p11 = pnand %p656_p9, %p996_p0 }
  0xa6   : > { %p662_p5 = por %p661_p13, %p660_p6 }
  0xa7   : > { %p658_p3 = pneg %p657_p11 }
  0xa8   : > { %p664_p7 = por %p663_p8, %p662_p5 }
  0xaa   : > { %p665_p4 = pnand %p664_p7, %p658_p3 }
  0xac   : > { %668 = shalt.err (!%p665_p4)
}
  0xad   : > { %509 = dma.vmem_to_hbm [thread:$0]  (%p996_p0), %s929_s19, 32, %s934_s27, %s357_s28  }
  0xae PF: > { %s385_s29 = sand.u32 1, %s707_s9   ;;  %p997_p10 = scmp.ne.s32.totalorder %s989_s24, 0 }
  0xaf   : > { %p998_p12 = scmp.ge.s32.totalorder %s727_s14, 2  ;;  %s386_s16 = scalar_lea.sflag [#allocation4], %s385_s29 }
  0xb1   : > { %p519_p1 = pnand %p998_p12, %p997_p10 }
  0xb3   : > { %702 = dma.done.wait (!%p519_p1), %s386_s16, 32  }
  0xb4   : > { %704 = vsyncadd (!%p519_p1), %s386_s16, 4294967264  ;;  %s21_s14 = sadd.s32 1, %s727_s14   ;;  %s999_s9 = smov %s711_s10 }
  0xb5   : > { %p18_p2 = scmp.ge.s32.totalorder %s21_s14, 4   ;;  %s1000_s10 = smov %s715_s11 }
  0xb6   : > { %s1001_s11 = smov %s805_s23  ;;  %s1002_s12 = smov %s723_s13 }
  0xb7   : > { %s1003_s13 = smov %s1005_s17  ;;  %20 = sbr.rel (!%p18_p2) target bundleno = 8 (0x8), region = 86 }
  0xbe   :  { %391 = vsyncpa [#allocation3], 1 }
  0xbf   :  { %393 = vsyncpa [#allocation3 + $0x1], 1 }
  0xc0   :  { %394 = vsyncpa [#allocation6], 1 }
  0xc1   :  { %396 = vsyncpa [#allocation6 + $0x1], 1 }
  0xc2   :  { %397 = vsyncpa [#allocation4], 1 }
  0xc3   :  { %399 = vsyncpa [#allocation4 + $0x1], 1 }

</bundles_post_ra>
